<compile_context>
chip_gen: v7x
topology: tpu7x:2x2x1
jax: 0.10.0
libtpu: 0.0.40
codegen_flags: <defaults>
</compile_context>

<pallas_src>
import jax
import jax.numpy as jnp
from jax.experimental import pallas as pl
from jax.experimental.pallas import tpu as pltpu

EPS = 0.001

NP = 32       # node count 25 -> padded to a sublane multiple of 8
FIN_P = 32    # input feature dim 3 -> small padded contraction dim (cheap DMA, MXU handles it)
FOUT_P = 128  # hidden / output feature dim 20 -> full lane width (lane-dense stores, feeds W2's K)


# ----------------------------- Pallas kernel ------------------------------

def _gin_kernel(adj_ref, x_ref, w1_ref, b1_ref, w2_ref, b2_ref, out_ref):
    # adj_ref already contains (1 + eps) on the diagonal, so the GIN update
    #   h = (1 + eps) * x + sum_neighbors(x)
    # is a single MXU matmul.
    h = jnp.dot(adj_ref[...], x_ref[...], preferred_element_type=jnp.float32)       # [NP, FIN_P]

    # MLP: Linear(3 -> 20) -> ReLU -> Linear(20 -> 20), all operands resident in VMEM.
    z = jnp.dot(h, w1_ref[...], preferred_element_type=jnp.float32) + b1_ref[...]   # [NP, FOUT_P]
    z = jnp.maximum(z, 0.0)                                                          # ReLU (VPU)
    out = jnp.dot(z, w2_ref[...], preferred_element_type=jnp.float32) + b2_ref[...]  # [NP, FOUT_P]

    out_ref[...] = out


def gin_layer_pallas(adj_hat_p, x_p, w1_p, b1_p, w2_p, b2_p):
    return pl.pallas_call(
        _gin_kernel,
        out_shape=jax.ShapeDtypeStruct((NP, FOUT_P), jnp.float32),
        in_specs=[pl.BlockSpec(memory_space=pltpu.MemorySpace.VMEM)] * 6,
        out_specs=pl.BlockSpec(memory_space=pltpu.MemorySpace.VMEM),
    )(adj_hat_p, x_p, w1_p, b1_p, w2_p, b2_p)


# ------------------------------ model forward ------------------------------

def gin_forward_pallas(x, edge_index, W1, b1, W2, b2, eps=EPS):
    N, fin = x.shape
    fhid = W1.shape[1]
    fout = W2.shape[1]
    src, dst = edge_index[0], edge_index[1]

    # Dense weighted adjacency (target-major); .add counts duplicate edges like PyG scatter-add.
    # Fold the (1 + eps) self-term into the diagonal (only on the first N real nodes).
    adj = jnp.zeros((NP, NP), jnp.float32).at[dst, src].add(1.0)
    diag = jnp.zeros((NP,), jnp.float32).at[:N].set(1.0 + eps)
    adj_hat_p = adj + jnp.diag(diag)

    x_p = jnp.zeros((NP, FIN_P), jnp.float32).at[:N, :fin].set(x)
    w1_p = jnp.zeros((FIN_P, FOUT_P), jnp.float32).at[:fin, :fhid].set(W1)
    b1_p = jnp.zeros((1, FOUT_P), jnp.float32).at[0, :fhid].set(b1)
    w2_p = jnp.zeros((FOUT_P, FOUT_P), jnp.float32).at[:fhid, :fout].set(W2)
    b2_p = jnp.zeros((1, FOUT_P), jnp.float32).at[0, :fout].set(b2)

    out_p = gin_layer_pallas(adj_hat_p, x_p, w1_p, b1_p, w2_p, b2_p)
    return out_p[:N, :fout]


# --------------------------- pure-JAX reference ----------------------------

def gin_forward_ref(x, edge_index, W1, b1, W2, b2, eps=EPS):
    N = x.shape[0]
    adj = jnp.zeros((N, N), jnp.float32).at[edge_index[1], edge_index[0]].add(1.0)
    h = (1.0 + eps) * x + adj @ x
    z = jnp.maximum(h @ W1 + b1, 0.0)
    return z @ W2 + b2


# ----------------------------------- main ----------------------------------

if __name__ == "__main__":
    N, IN, OUT, E = 25, 3, 20, 50   # 25 nodes, 3 input features, 20 output features, 50 random edges

    key = jax.random.PRNGKey(0)
    kx, ke, k1, k2, k3, k4 = jax.random.split(key, 6)
    x = jax.random.normal(kx, (N, IN), jnp.float32)
    edge_index = jax.random.randint(ke, (2, E), 0, N, dtype=jnp.int32)

    # nn.Linear-style parameters (exact init scheme is irrelevant for kernel correctness)
    W1 = jax.random.uniform(k1, (IN, OUT), jnp.float32, -0.5, 0.5)
    b1 = jax.random.uniform(k2, (OUT,), jnp.float32, -0.5, 0.5)
    W2 = jax.random.uniform(k3, (OUT, OUT), jnp.float32, -0.5, 0.5)
    b2 = jax.random.uniform(k4, (OUT,), jnp.float32, -0.5, 0.5)

    out = jax.block_until_ready(gin_forward_pallas(x, edge_index, W1, b1, W2, b2))

    ref = gin_forward_ref(x, edge_index, W1, b1, W2, b2)
    assert out.shape == (N, OUT), out.shape
    assert jnp.allclose(out, ref, atol=1e-4, rtol=1e-4), float(jnp.max(jnp.abs(out - ref)))

    print("KERNEL_OK")
</pallas_src>

<mosaic_0001>
module attributes {stable_mosaic.version = 11 : i64} {
  func.func @_gin_kernel(%arg0: memref<32x32xf32, #tpu.memory_space<vmem>>, %arg1: memref<32x32xf32, #tpu.memory_space<vmem>>, %arg2: memref<32x128xf32, #tpu.memory_space<vmem>>, %arg3: memref<1x128xf32, #tpu.memory_space<vmem>>, %arg4: memref<128x128xf32, #tpu.memory_space<vmem>>, %arg5: memref<1x128xf32, #tpu.memory_space<vmem>>, %arg6: memref<32x128xf32, #tpu.memory_space<vmem>>) attributes {dimension_semantics = [], scalar_prefetch = 0 : i64, scratch_operands = 0 : i64, tpu.core_type = #tpu.core_type<tc>} {
    %c0 = arith.constant 0 : index
    %c0_0 = arith.constant 0 : index
    %0 = vector.load %arg0[%c0, %c0_0] : memref<32x32xf32, #tpu.memory_space<vmem>>, vector<32x32xf32>
    %c0_1 = arith.constant 0 : index
    %c0_2 = arith.constant 0 : index
    %1 = vector.load %arg1[%c0_1, %c0_2] : memref<32x32xf32, #tpu.memory_space<vmem>>, vector<32x32xf32>
    %cst = arith.constant dense<0.000000e+00> : vector<32x32xf32>
    %2 = tpu.matmul %0, %1, %cst {dimension_numbers = #tpu.dot_dimension_numbers<[1], [0], [0], [1], [0, 0, 1, 1], [], []>} : vector<32x32xf32>, vector<32x32xf32>, vector<32x32xf32> -> vector<32x32xf32>
    %c0_3 = arith.constant 0 : index
    %c0_4 = arith.constant 0 : index
    %3 = vector.load %arg2[%c0_3, %c0_4] : memref<32x128xf32, #tpu.memory_space<vmem>>, vector<32x128xf32>
    %cst_5 = arith.constant dense<0.000000e+00> : vector<32x128xf32>
    %4 = tpu.matmul %2, %3, %cst_5 {dimension_numbers = #tpu.dot_dimension_numbers<[1], [0], [0], [1], [0, 0, 1, 1], [], []>} : vector<32x32xf32>, vector<32x128xf32>, vector<32x128xf32> -> vector<32x128xf32>
    %c0_6 = arith.constant 0 : index
    %c0_7 = arith.constant 0 : index
    %5 = vector.load %arg3[%c0_6, %c0_7] : memref<1x128xf32, #tpu.memory_space<vmem>>, vector<1x128xf32>
    %6 = vector.broadcast %5 : vector<1x128xf32> to vector<32x128xf32>
    %7 = arith.addf %4, %6 : vector<32x128xf32>
    %cst_8 = arith.constant 0.000000e+00 : f32
    %8 = vector.broadcast %cst_8 : f32 to vector<32x128xf32>
    %9 = arith.maximumf %7, %8 : vector<32x128xf32>
    %c0_9 = arith.constant 0 : index
    %c0_10 = arith.constant 0 : index
    %10 = vector.load %arg4[%c0_9, %c0_10] : memref<128x128xf32, #tpu.memory_space<vmem>>, vector<128x128xf32>
    %cst_11 = arith.constant dense<0.000000e+00> : vector<32x128xf32>
    %11 = tpu.matmul %9, %10, %cst_11 {dimension_numbers = #tpu.dot_dimension_numbers<[1], [0], [0], [1], [0, 0, 1, 1], [], []>} : vector<32x128xf32>, vector<128x128xf32>, vector<32x128xf32> -> vector<32x128xf32>
    %c0_12 = arith.constant 0 : index
    %c0_13 = arith.constant 0 : index
    %12 = vector.load %arg5[%c0_12, %c0_13] : memref<1x128xf32, #tpu.memory_space<vmem>>, vector<1x128xf32>
    %13 = vector.broadcast %12 : vector<1x128xf32> to vector<32x128xf32>
    %14 = arith.addf %11, %13 : vector<32x128xf32>
    %c0_14 = arith.constant 0 : index
    %c0_15 = arith.constant 0 : index
    %15 = vector.load %arg6[%c0_14, %c0_15] : memref<32x128xf32, #tpu.memory_space<vmem>>, vector<32x128xf32>
    tpu.vector_store %arg6[%c0_14, %c0_15], %14 {strides = array<i32>} : memref<32x128xf32, #tpu.memory_space<vmem>>, vector<32x128xf32>,
    return
  }
}

</mosaic_0001>

<bundles_post_ra>
// kernel: tpu_custom_call.1
= control target key start
LH: loop header
LB: loop body
LE: loop exit
PB: predicated region body
PF: predicated region fallthrough
CT: control target
= control target key end

     0   :  { %11 = vsyncpa [#allocation3], 0  ;;  %s858_s0 = inlined_call_operand.hbm [shape: f32[32,32], index: 0, kind: input, shape index: {}]   ;;  %s859_s1 = inlined_call_operand.hbm [shape: f32[32,32], index: 1, kind: input, shape index: {}]   ;;  %s860_s2 = inlined_call_operand.hbm [shape: f32[32,128], index: 2, kind: input, shape index: {}]   ;;  %s861_s3 = inlined_call_operand.vmem [shape: f32[1,128], index: 3, kind: input, shape index: {}]   ;;  %s862_s4 = inlined_call_operand.hbm [shape: f32[128,128], index: 4, kind: input, shape index: {}]   ;;  %s863_s5 = inlined_call_operand.vmem [shape: f32[1,128], index: 5, kind: input, shape index: {}]   ;;  %s864_s6 = inlined_call_operand.hbm [shape: f32[32,128], index: 6, kind: output, shape index: {}]  }
   0x1   :  { %12 = vsyncpa [#allocation6], 0 }
   0x2   :  { %13 = vsyncpa [#allocation9], 0 }
   0x3   :  { %14 = vsyncpa [#allocation4], 0  ;;  %s713_s21 = smov [#allocation5]   ;;  %s714_s23 = smov [#allocation2]  }
   0x4   :  { %s32_s22 = sshll.u32 %s713_s21, 4  ;;  %s20_s24 = sshll.u32 %s714_s23, 4  ;;  %s33_s22 = int_to_ptr.vmem [resolvable:$true] %s32_s22  ;;  %s755_s24 = int_to_ptr.vmem [resolvable:$true] %s20_s24 }
   0x5   :  { %s595_s27 = scalar_lea.hbm %s859_s1, 512 }
   0x6   :  { %p596_p0 = scmp.ne.s32.totalorder %s859_s1, %s595_s27  ;;  %p599_p1 = scmp.lt.u32.totalorder %s595_s27, %s859_s1 }
   0x8   :  { %p601_p2 = pnand %p599_p1, %p596_p0 }
   0xa   :  { %604 = shalt.err (!%p601_p2)
}
   0xb   :  { %s605_s8 = scalar_lea.vmem %s33_s22, 512  ;;  %p610_p4 = scmp.lt.s32.totalorder %s33_s22, %s33_s22 }
   0xc   :  { %p606_p3 = scmp.ne.s32.totalorder %s33_s22, %s605_s8  ;;  %p611_p5 = scmp.lt.s32.totalorder %s605_s8, %s605_s8 }
   0xe   :  { %p612_p6 = por %p611_p5, %p610_p4 }
  0x10   :  { %p613_p7 = pnand %p612_p6, %p606_p3 }
  0x12   :  { %616 = shalt.err (!%p613_p7)
}
  0x13   :  { %s715_s9 = smov 128   ;;  %s716_s10 = smov 8  }
  0x14   :  { %38 = dma.hbm_to_vmem [thread:$0]  %s859_s1, 512, %s33_s22, [#allocation6], %s715_s9, %s715_s9, %s716_s10  }
  0x15   :  { %s617_s15 = scalar_lea.hbm %s858_s0, 512 }
  0x16   :  { %p618_p8 = scmp.ne.s32.totalorder %s858_s0, %s617_s15  ;;  %p621_p9 = scmp.lt.u32.totalorder %s617_s15, %s858_s0 }
  0x18   :  { %p623_p10 = pnand %p621_p9, %p618_p8 }
  0x1a   :  { %626 = shalt.err (!%p623_p10)
}
  0x1b   :  { %s627_s20 = scalar_lea.vmem %s755_s24, 512  ;;  %p632_p12 = scmp.lt.s32.totalorder %s755_s24, %s755_s24 }
  0x1c   :  { %p628_p11 = scmp.ne.s32.totalorder %s755_s24, %s627_s20  ;;  %p633_p13 = scmp.lt.s32.totalorder %s627_s20, %s627_s20 }
  0x1e   :  { %p634_p0 = por %p633_p13, %p632_p12 }
  0x20   :  { %p635_p1 = pnand %p634_p0, %p628_p11 }
  0x22   :  { %638 = shalt.err (!%p635_p1)
}
  0x23   :  { %26 = dma.hbm_to_vmem [thread:$0]  %s858_s0, 512, %s755_s24, [#allocation3], %s715_s9, %s715_s9, %s716_s10  }
  0x24   :  { %s717_s22 = smov [#allocation7]   ;;  %s718_s25 = smov [#allocation8]  }
  0x25   :  { %s44_s23 = sshll.u32 %s717_s22, 4  ;;  %s58_s26 = sshll.u32 %s718_s25, 4  ;;  %s45_s23 = int_to_ptr.vmem [resolvable:$true] %s44_s23  ;;  %s792_s26 = int_to_ptr.vmem [resolvable:$true] %s58_s26 }
  0x26   :  { %s639_s29 = scalar_lea.hbm %s860_s2, 512 }
  0x27   :  { %p640_p2 = scmp.ne.s32.totalorder %s860_s2, %s639_s29  ;;  %p643_p3 = scmp.lt.u32.totalorder %s639_s29, %s860_s2 }
  0x29   :  { %p645_p4 = pnand %p643_p3, %p640_p2 }
  0x2b   :  { %648 = shalt.err (!%p645_p4)
}
  0x2c   :  { %s649_s0 = scalar_lea.vmem %s45_s23, 512  ;;  %p654_p6 = scmp.lt.s32.totalorder %s45_s23, %s45_s23 }
  0x2d   :  { %p650_p5 = scmp.ne.s32.totalorder %s45_s23, %s649_s0  ;;  %p655_p7 = scmp.lt.s32.totalorder %s649_s0, %s649_s0 }
  0x2f   :  { %p656_p8 = por %p655_p7, %p654_p6 }
  0x31   :  { %p657_p9 = pnand %p656_p8, %p650_p5 }
  0x33   :  { %660 = shalt.err (!%p657_p9)
}
  0x34   :  { %50 = dma.hbm_to_vmem [thread:$0]  %s860_s2, 512, %s45_s23, [#allocation6], %s715_s9, %s715_s9, %s716_s10  }
  0x35   :  { %s661_s15 = scalar_lea.hbm %s862_s4, 2048 }
  0x36   :  { %p662_p10 = scmp.ne.s32.totalorder %s862_s4, %s661_s15  ;;  %p665_p11 = scmp.lt.u32.totalorder %s661_s15, %s862_s4 }
  0x38   :  { %p667_p12 = pnand %p665_p11, %p662_p10 }
  0x3a   :  { %670 = shalt.err (!%p667_p12)
}
  0x3b   :  { %s671_s20 = scalar_lea.vmem %s792_s26, 2048  ;;  %p676_p0 = scmp.lt.s32.totalorder %s792_s26, %s792_s26 }
  0x3c   :  { %p672_p13 = scmp.ne.s32.totalorder %s792_s26, %s671_s20  ;;  %p677_p1 = scmp.lt.s32.totalorder %s671_s20, %s671_s20 }
  0x3e   :  { %p678_p2 = por %p677_p1, %p676_p0 }
  0x40   :  { %p679_p3 = pnand %p678_p2, %p672_p13 }
  0x42   :  { %682 = shalt.err (!%p679_p3)
}
  0x43   :  { %64 = dma.hbm_to_vmem [thread:$0]  %s862_s4, 2048, %s792_s26, [#allocation9], %s715_s9, %s715_s9, %s716_s10  }
  0x44   :  { %705 = dma.done.wait [#allocation3], 512  }
  0x45   :  { %706 = vsyncadd [#allocation3], 4294966784 }
  0x46   :  { %707 = dma.done.wait [#allocation6], 1024  }
  0x47   :  { %708 = vsyncadd [#allocation6], 4294966272 }
  0x48   :  { %709 = dma.done.wait [#allocation9], 2048  }
  0x49   :  { %710 = vsyncadd [#allocation9], 4294965248  ;;  %vm87_vm0 = vcmask 261120   ;;  %v83_v0 = vld [vmem:[#allocation5] sm:$0xff]  ;;  %v84_v1 = vld [vmem:[#allocation5 + $0x8] sm:$0xff] }
  0x4a   :  { %v85_v2 = vld [vmem:[#allocation5 + $0x10] sm:$0xff]  ;;  %v540_v3 = vpack.c.bf16 %v84_v1, %v83_v0  ;;  %v86_v4 = vld [vmem:[#allocation5 + $0x18] sm:$0xff]  ;;  %v79_v5 = vld [vmem:[#allocation2] sm:$0xff] }
  0x4b   :  { %v544_v6 = vpack.c.bf16 %v86_v4, %v85_v2  ;;  %482 = vmatprep.mubr.msk.f32.mxu1 %vm87_vm0, %v79_v5  ;;  %v185_v7 = vld [vmem:[#allocation7] sm:$0xff]  ;;  %v186_v8 = vld [vmem:[#allocation7 + $0x8] sm:$0xff]  ;;  %v187_v10 = vld [vmem:[#allocation7 + $0x10] sm:$0xff] }
  0x4c   :  { %541 = vmatprep.subr.bf16.mxu1 %v540_v3  ;;  %v548_v9 = vpack.c.bf16 %v186_v8, %v185_v7  ;;  %v188_v11 = vld [vmem:[#allocation7 + $0x18] sm:$0xff]  ;;  %v80_v12 = vld [vmem:[#allocation2 + $0x8] sm:$0xff]  ;;  %v81_v13 = vld [vmem:[#allocation2 + $0x10] sm:$0xff] }
  0x4d   :  { %543 = vmatpush3.bf16.msra.mxu1 %v540_v3  ;;  %v552_v14 = vpack.c.bf16 %v188_v11, %v187_v10  ;;  %v82_v15 = vld [vmem:[#allocation2 + $0x18] sm:$0xff]  ;;  %v297_v16 = vld [vmem:[#allocation8] sm:$0xff]  ;;  %v298_v17 = vld [vmem:[#allocation8 + $0x8] sm:$0xff] }
  0x4e   :  { %545 = vmatprep.subr.bf16.mxu1 %v544_v6  ;;  %v299_v18 = vld [vmem:[#allocation8 + $0x10] sm:$0xff]  ;;  %v556_v19 = vpack.c.bf16 %v298_v17, %v297_v16  ;;  %v300_v20 = vld [vmem:[#allocation8 + $0x18] sm:$0xff]  ;;  %v301_v22 = vld [vmem:[#allocation8 + $0x20] sm:$0xff] }
  0x4f   :  { %v560_v21 = vpack.c.bf16 %v300_v20, %v299_v18  ;;  %v302_v23 = vld [vmem:[#allocation8 + $0x28] sm:$0xff]  ;;  %v303_v25 = vld [vmem:[#allocation8 + $0x30] sm:$0xff]  ;;  %v304_v26 = vld [vmem:[#allocation8 + $0x38] sm:$0xff] }
  0x50   :  { %557 = vmatprep.subr.bf16.mxu0 %v556_v19  ;;  %v564_v24 = vpack.c.bf16 %v302_v23, %v301_v22  ;;  %v568_v27 = vpack.c.bf16 %v304_v26, %v303_v25  ;;  %v305_v28 = vld [vmem:[#allocation8 + $0x40] sm:$0xff]  ;;  %v306_v29 = vld [vmem:[#allocation8 + $0x48] sm:$0xff]  ;;  %v307_v31 = vld [vmem:[#allocation8 + $0x50] sm:$0xff] }
  0x51   :  { %547 = vmatpush3.bf16.msra.mxu1 %v544_v6  ;;  %559 = vmatpush3.bf16.msra.mxu0 %v556_v19  ;;  %v572_v30 = vpack.c.bf16 %v306_v29, %v305_v28  ;;  %v308_v32 = vld [vmem:[#allocation8 + $0x58] sm:$0xff]  ;;  %v309_v34 = vld [vmem:[#allocation8 + $0x60] sm:$0xff]  ;;  %v310_v35 = vld [vmem:[#allocation8 + $0x68] sm:$0xff] }
  0x52   :  { %549 = vmatprep.subr.bf16.mxu1 %v548_v9  ;;  %561 = vmatprep.subr.bf16.mxu0 %v560_v21  ;;  %v576_v33 = vpack.c.bf16 %v308_v32, %v307_v31  ;;  %v580_v36 = vpack.c.bf16 %v310_v35, %v309_v34  ;;  %v311_v41 = vld [vmem:[#allocation8 + $0x70] sm:$0xff]  ;;  %v312_v42 = vld [vmem:[#allocation8 + $0x78] sm:$0xff]  ;;  %v432_v44 = vld [vmem:[%s861_s3] ss:$0 sm:$0xff]  ;;  %s719_s3 = smov [#allocation10]  }
  0x53   :  { %v584_v43 = vpack.c.bf16 %v312_v42, %v311_v41  ;;  %v437_v57 = vld [vmem:[%s863_s5] ss:$0 sm:$0xff]  ;;  %s414_s25 = sshll.u32 %s719_s3, 4  ;;  %s415_s25 = int_to_ptr.vmem [resolvable:$true] %s414_s25 }
  0x54   :  { %483 = vmatmul.mubr.msk.f32.vlgmr.msra.gmra.mrb[0].mxu1 %vm87_vm0, %v80_v12  ;;  %s683_s26 = scalar_lea.vmem %s415_s25, 512  ;;  %p688_p5 = scmp.lt.s32.totalorder %s415_s25, %s415_s25 }
  0x55   :  { %485 = vmatprep.mubr.msk.f32.mxu1 %vm87_vm0, %v81_v13  ;;  %551 = vmatpush3.bf16.msra.mxu1 %v548_v9  ;;  %p684_p4 = scmp.ne.s32.totalorder %s415_s25, %s683_s26  ;;  %p689_p6 = scmp.lt.s32.totalorder %s683_s26, %s683_s26 }
  0x56   :  { %553 = vmatprep.subr.bf16.mxu1 %v552_v14  ;;  %563 = vmatpush3.bf16.msra.mxu0 %v560_v21 }
  0x57   :  { %565 = vmatprep.subr.bf16.mxu0 %v564_v24  ;;  %p690_p7 = por %p689_p6, %p688_p5 }
  0x58   :  { %486 = vmatmul.mubr.msk.f32.gmra.mrb[2].mxu1 %vm87_vm0, %v82_v15 }
  0x59   :  { %555 = vmatpush3.bf16.msra.mxu1 %v552_v14  ;;  %p691_p8 = pnand %p690_p7, %p684_p4 }
  0x5a   :  { %567 = vmatpush3.bf16.msra.mxu0 %v564_v24 }
  0x5b   :  { %569 = vmatprep.subr.bf16.mxu0 %v568_v27 }
  0x5e   :  { %571 = vmatpush3.bf16.msra.mxu0 %v568_v27 }
  0x5f   :  { %573 = vmatprep.subr.bf16.mxu0 %v572_v30 }
  0x62   :  { %575 = vmatpush3.bf16.msra.mxu0 %v572_v30 }
  0x63   :  { %577 = vmatprep.subr.bf16.mxu0 %v576_v33 }
  0x66   :  { %579 = vmatpush3.bf16.msra.mxu0 %v576_v33 }
  0x67   :  { %581 = vmatprep.subr.bf16.mxu0 %v580_v36 }
  0x6a   :  { %583 = vmatpush3.bf16.msra.mxu0 %v580_v36 }
  0x6b   :  { %585 = vmatprep.subr.bf16.mxu0 %v584_v43 }
  0x6e   :  { %587 = vmatpush3.bf16.msra.mxu0 %v584_v43 }
 0x127   :  { %v484_v37 = vpop.f32.mrb[0].mxu1 }
 0x128   :  { %v166_v38 = vpop.f32.mrb[1].mxu1 }
 0x129   :  { %496 = vmatprep.mubr.msk.f32.mxu1 %vm87_vm0, %v166_v38 }
 0x12a   :  { %497 = vmatmul.mubr.msk.f32.vlgmr.msra.gmra.mrb[4].mxu1 %vm87_vm0, %v484_v37 }
 0x12b   :  { %v487_v39 = vpop.f32.mrb[2].mxu1 }
 0x12c   :  { %v176_v40 = vpop.f32.mrb[3].mxu1 }
 0x12d   :  { %499 = vmatprep.mubr.msk.f32.mxu1 %vm87_vm0, %v176_v40 }
 0x12e   :  { %500 = vmatmul.mubr.msk.f32.gmra.mrb[6].mxu1 %vm87_vm0, %v487_v39 }
 0x1fd   :  { %v498_v45 = vpop.f32.mrb[4].mxu1 }
 0x1fe   :  { %v280_v46 = vadd.f32 %v498_v45, %v432_v44  ;;  %v274_v47 = vpop.f32.mrb[5].mxu1 }
 0x1ff   :  { %v275_v48 = vadd.f32 %v432_v44, %v274_v47 }
 0x200   :  { %v294_v51 = vmax.f32 %v280_v46, 0.0 }
 0x201   :  { %v501_v49 = vpop.f32.mrb[6].mxu1  ;;  %v293_v50 = vmax.f32 %v275_v48, 0.0 }
 0x202   :  { %v290_v52 = vadd.f32 %v501_v49, %v432_v44  ;;  %v284_v53 = vpop.f32.mrb[7].mxu1 }
 0x203   :  { %v285_v54 = vadd.f32 %v432_v44, %v284_v53  ;;  %534 = vmatprep.mubr.f32.mxu0 %v293_v50 }
 0x204   :  { %535 = vmatmul.mubr.f32.vlgmr.msra.gmra.mrb[0].mxu0 %v294_v51  ;;  %v296_v56 = vmax.f32 %v290_v52, 0.0 }
 0x205   :  { %v295_v55 = vmax.f32 %v285_v54, 0.0 }
 0x207   :  { %537 = vmatprep.mubr.f32.mxu0 %v295_v55 }
 0x208   :  { %538 = vmatmul.mubr.f32.gmra.mrb[2].mxu0 %v296_v56 }
 0x2d7   :  { %v536_v58 = vpop.f32.mrb[0].mxu0 }
 0x2d8   :  { %v392_v59 = vadd.f32 %v536_v58, %v437_v57  ;;  %v386_v60 = vpop.f32.mrb[1].mxu0 }
 0x2d9   :  { %v387_v61 = vadd.f32 %v437_v57, %v386_v60 }
 0x2da   :  { %406 = vst [vmem:[#allocation10 + $0x8] sm:$0xff] %v392_v59 }
 0x2db   :  { %405 = vst [vmem:[#allocation10] sm:$0xff] %v387_v61  ;;  %v539_v62 = vpop.f32.mrb[2].mxu0 }
 0x2dc   :  { %v402_v63 = vadd.f32 %v539_v62, %v437_v57  ;;  %v396_v0 = vpop.f32.mrb[3].mxu0 }
 0x2dd   :  { %v397_v1 = vadd.f32 %v437_v57, %v396_v0 }
 0x2de   :  { %408 = vst [vmem:[#allocation10 + $0x18] sm:$0xff] %v402_v63 }
 0x2df   :  { %407 = vst [vmem:[#allocation10 + $0x10] sm:$0xff] %v397_v1 }
 0x2e0   :  { %694 = shalt.err (!%p691_p8)
}
 0x2e1   :  { %s695_s28 = scalar_lea.hbm %s864_s6, 512 }
 0x2e2   :  { %p696_p9 = scmp.ne.s32.totalorder %s864_s6, %s695_s28  ;;  %p699_p10 = scmp.lt.u32.totalorder %s695_s28, %s864_s6 }
 0x2e4   :  { %p701_p11 = pnand %p699_p10, %p696_p9 }
 0x2e6   :  { %704 = shalt.err (!%p701_p11)
}
 0x2e7   :  { %420 = dma.vmem_to_hbm [thread:$0]  %s415_s25, 512, %s864_s6, [#allocation4], %s715_s9, %s715_s9, %s716_s10  }
 0x2e8   :  { %711 = dma.done.wait [#allocation4], 512  }
 0x2e9   :  { %712 = vsyncadd [#allocation4], 4294966784 }
 0x2ea   :  { %424 = vsyncpa [#allocation3], 1 }
 0x2eb   :  { %425 = vsyncpa [#allocation6], 1 }
 0x2ec   :  { %426 = vsyncpa [#allocation9], 1 }
 0x2ed   :  { %427 = vsyncpa [#allocation4], 1 }

</bundles_post_ra>
